<compile_context>
chip_gen: v5e
topology: v5e:2x2
jax: 0.10.0
libtpu: 0.0.40
codegen_flags: <defaults>
</compile_context>

<pallas_src>
import jax
import jax.numpy as jnp
from jax import lax
from jax.experimental import pallas as pl
from jax.experimental.pallas import tpu as pltpu


def _tile_lanes(x, total):
    """Repeat a (r, w) array along the lane axis up to `total` columns (total % w == 0).

    Uses log2-many lane concatenations + one static slice (cheap, well supported in Mosaic)
    instead of jnp.tile's broadcast+reshape.
    """
    out = x
    while out.shape[-1] < total:
        out = jnp.concatenate([out, out], axis=-1)
    return out[..., :total]


def level_layer_kernel(level_t_ref, growth_ref, season_ref,
                       wg_ref, bg_ref, ws_ref, bs_ref,
                       alpha_ref, v0_ref, out_ref):
    C, rows = level_t_ref.shape            # (C, BB*T)  lane-dense working layout
    BB, T, D = growth_ref.shape
    f32 = jnp.float32

    alpha = alpha_ref[...].astype(f32)     # (C, 1) = sigmoid(_smoothing_weight)
    v0 = v0_ref[...].astype(f32)           # (C, 1)
    bg = bg_ref[...].astype(f32)           # (C, 1)
    bs = bs_ref[...].astype(f32)           # (C, 1)

    # ---- MXU: both projections, batch folded into rows = BB*T, produced directly
    #      channel-major via a transposed-RHS dot_general (A @ B^T pattern). --------------
    g2 = growth_ref[...].reshape(rows, D)          # leading-dim collapse, free
    s2 = season_ref[...].reshape(rows, D)
    trans_rhs = (((1,), (1,)), ((), ()))           # contract the D axis of both operands
    gp_t = lax.dot_general(wg_ref[...], g2, trans_rhs,
                           preferred_element_type=f32) + bg            # (C, rows)
    sp_t = lax.dot_general(ws_ref[...], s2, trans_rhs,
                           preferred_element_type=f32) + bs            # (C, rows)

    x_t = level_t_ref[...].astype(f32) - sp_t                          # (C, rows)

    # in-batch time index of every lane (lane r -> r mod T), built by lane concatenation
    t_small = lax.broadcasted_iota(jnp.int32, (1, T), 1)               # (1, T): 0..T-1
    t_row = _tile_lanes(t_small, rows)                                 # (1, rows)

    # ---- exponential smoothing: s_t = alpha * s_{t-1} + (1-alpha) * x_t -----------------
    # Hillis-Steele inclusive scan along lanes.  The segment coefficient at doubling
    # distance d is the constant alpha^d, kept as a (C,1) column and updated by squaring
    # (no full-width "A" array, no exp of a zero exponent).  The t_row mask both blanks the
    # roll wrap-around and keeps batches within the block from mixing.
    Bv = (1.0 - alpha) * x_t                                           # (C, rows)
    coef = alpha                                                       # alpha^d
    d = 1
    while d < T:
        prev = jnp.where(t_row >= d, jnp.roll(Bv, d, axis=1), 0.0)
        Bv = coef * prev + Bv
        coef = coef * coef
        d *= 2

    # ---- decay weights, hoisted to (C, T) on the EUP, then lane-tiled over BB ------------
    log_alpha = jnp.log(alpha)                                         # (C, 1)
    tf = t_small.astype(f32)                                           # (1, T)
    init_w = jnp.exp((tf + 1.0) * log_alpha)                           # alpha^{t+1}   (C, T)
    aux_w = jnp.exp((T - tf) * log_alpha)                              # alpha^{T-t}   (C, T)

    out_t = (_tile_lanes(init_w, rows) * v0
             + Bv
             + _tile_lanes(aux_w, rows) * gp_t)                        # (C, rows)
    out_ref[...] = out_t.astype(out_ref.dtype)                         # single dense store


def _pick_block_b(B, T, D, itemsize, *, max_rows=2048, max_block_bytes=8 << 20):
    """Per-grid-step batch block.

    Constraints:
      * divides B,
      * the lane-dense (C, block_b*T) level/output blocks either cover the full lane axis
        (block_b == B) or are a multiple of 128 lanes,
      * the (block_b, T, D) activation block stays modest so double-buffered growth+season
        plus scan temporaries fit the default scoped VMEM budget (v7x only has 64 MiB VMEM).
    Preference: >= 2 grid steps when per-step tiles stay >= 128 rows (keeps both v7x
    TensorCores busy); otherwise the largest feasible block (fewer grid-step overheads on
    the single-TC v5e / v6e, which also have 128 MiB VMEM headroom).
    """
    def ok(bb):
        if B % bb:
            return False
        if bb != B and (bb * T) % 128:
            return False
        if bb * T > max_rows:
            return False
        if bb * T * D * itemsize > max_block_bytes:
            return False
        return True

    feasible = [bb for bb in range(1, B + 1) if ok(bb)]
    if not feasible:
        # TODO(synk): no batch split satisfies both lane-density and VMEM constraints;
        # fall back to the whole batch in one block.
        return B
    multi = [bb for bb in feasible if B // bb >= 2 and bb * T >= 128]
    if multi:
        return max(multi)
    return max(feasible)


def level_layer(level, growth, season, wg, bg, ws, bs, alpha, v0,
                *, block_b=None, out_dtype=None, vmem_limit_bytes=None):
    """LevelLayer forward.

    level : (B, T, C)     growth, season : (B, T, D)
    wg, ws: (D, C)  (transposed vs. the PyTorch nn.Linear weight)
    bg, bs, alpha, v0 : (1, C)   with alpha = sigmoid(_smoothing_weight)
    Returns (B, T, C) in `out_dtype` (defaults to level.dtype).
    """
    B, T, C = level.shape
    D = growth.shape[-1]
    if out_dtype is None:
        out_dtype = level.dtype
    if block_b is None:
        block_b = _pick_block_b(B, T, D, jnp.dtype(growth.dtype).itemsize)
    assert B % block_b == 0, (B, block_b)

    # Cheap re-layouts of the *small* operands only (the big (B,T,D) activations are read
    # in their native layout).  The kernel wants channel-major rows on lanes.
    level_t = level.reshape(B * T, C).T            # (C, B*T)
    wg_cd = wg.T                                   # (C, D)  == PyTorch weight layout
    ws_cd = ws.T
    bg_c = bg.reshape(C, 1)
    bs_c = bs.reshape(C, 1)
    alpha_c = alpha.reshape(C, 1)
    v0_c = v0.reshape(C, 1)

    rows = block_b * T
    grid_spec = pltpu.PrefetchScalarGridSpec(
        num_scalar_prefetch=0,
        grid=(B // block_b,),
        in_specs=[
            pl.BlockSpec((C, rows), lambda b: (0, b)),            # level  (C, B*T)
            pl.BlockSpec((block_b, T, D), lambda b: (b, 0, 0)),   # growth
            pl.BlockSpec((block_b, T, D), lambda b: (b, 0, 0)),   # season
            pl.BlockSpec((C, D), lambda b: (0, 0)),               # W_growth (C, D)
            pl.BlockSpec((C, 1), lambda b: (0, 0)),               # b_growth
            pl.BlockSpec((C, D), lambda b: (0, 0)),               # W_season (C, D)
            pl.BlockSpec((C, 1), lambda b: (0, 0)),               # b_season
            pl.BlockSpec((C, 1), lambda b: (0, 0)),               # alpha
            pl.BlockSpec((C, 1), lambda b: (0, 0)),               # v0
        ],
        out_specs=pl.BlockSpec((C, rows), lambda b: (0, b)),      # lane-dense slab
    )

    out_t = pl.pallas_call(
        level_layer_kernel,
        out_shape=jax.ShapeDtypeStruct((C, B * T), out_dtype),
        grid_spec=grid_spec,
        compiler_params=pltpu.CompilerParams(
            dimension_semantics=("parallel",),
            vmem_limit_bytes=vmem_limit_bytes),
    )(level_t, growth, season, wg_cd, bg_c, ws_cd, bs_c, alpha_c, v0_c)

    # (C, B*T) -> (B, T, C): tiny XLA transpose outside the kernel (C << D, negligible HBM).
    return out_t.reshape(C, B, T).transpose(1, 2, 0)


def level_layer_ref(level, growth, season, wg, bg, ws, bs, alpha, v0):
    """Pure-JAX reference, math taken straight from the PyTorch code."""
    B, T, C = level.shape
    gp = growth @ wg + bg[0]
    sp = season @ ws + bs[0]
    x = level - sp                                      # (B, T, C)
    a = alpha[0]                                        # (C,)
    i = jnp.arange(T, dtype=jnp.float32)[:, None]       # (T, 1)
    m = jnp.arange(T, dtype=jnp.float32)[None, :]       # (1, T)
    pw = jnp.where((m <= i)[..., None],
                   jnp.exp((i - m)[..., None] * jnp.log(a)), 0.0)     # (T, T, C)
    conv = jnp.einsum('imc,bmc->bic', (1.0 - a) * pw, x)
    init = jnp.exp((i + 1.0) * jnp.log(a)) * v0[0]                    # (T, C)
    aux = jnp.exp((T - i) * jnp.log(a)) * gp                          # (B, T, C)
    return init[None] + conv + aux


if __name__ == "__main__":
    B, T, D_MODEL, C_OUT = 2, 8, 32, 4

    key = jax.random.PRNGKey(0)
    ks = jax.random.split(key, 9)

    level = jax.random.normal(ks[0], (B, T, C_OUT), jnp.float32)
    growth = jax.random.normal(ks[1], (B, T, D_MODEL), jnp.float32)
    season = jax.random.normal(ks[2], (B, T, D_MODEL), jnp.float32)

    # Deterministic synthetic parameters (shapes from the module __init__).
    smoothing_weight = jax.random.normal(ks[3], (C_OUT, 1), jnp.float32)   # (nhead, 1)
    v0_param = jax.random.normal(ks[4], (1, 1, C_OUT, 1), jnp.float32)     # (1,1,nhead,dim=1)
    lim = 1.0 / (D_MODEL ** 0.5)
    wg_t = jax.random.uniform(ks[5], (C_OUT, D_MODEL), jnp.float32, -lim, lim)
    bg = jax.random.uniform(ks[6], (C_OUT,), jnp.float32, -lim, lim)
    ws_t = jax.random.uniform(ks[7], (C_OUT, D_MODEL), jnp.float32, -lim, lim)
    bs = jax.random.uniform(ks[8], (C_OUT,), jnp.float32, -lim, lim)

    # Repack for the wrapper layout.
    wg = wg_t.T                                                  # (D, C)
    ws = ws_t.T
    bg2 = bg[None, :]                                            # (1, C)
    bs2 = bs[None, :]
    alpha = jax.nn.sigmoid(smoothing_weight).reshape(1, C_OUT)   # (1, C)
    v0 = v0_param.reshape(1, C_OUT)                              # (1, C)

    # --- f32 path: tight check against the pure-JAX reference ----------------------------
    out = jax.block_until_ready(
        level_layer(level, growth, season, wg, bg2, ws, bs2, alpha, v0))
    ref = level_layer_ref(level, growth, season, wg, bg2, ws, bs2, alpha, v0)
    assert out.shape == (B, T, C_OUT)
    assert out.dtype == jnp.float32
    err = float(jnp.max(jnp.abs(out - ref)))
    assert jnp.allclose(out, ref, atol=1e-4, rtol=1e-4), err

    # --- bf16 end-to-end: bf16 activations, weights, level AND output; f32 in-kernel math.
    level_bf = level.astype(jnp.bfloat16)
    growth_bf = growth.astype(jnp.bfloat16)
    season_bf = season.astype(jnp.bfloat16)
    wg_bf = wg.astype(jnp.bfloat16)
    ws_bf = ws.astype(jnp.bfloat16)
    out_bf = jax.block_until_ready(
        level_layer(level_bf, growth_bf, season_bf, wg_bf, bg2, ws_bf, bs2, alpha, v0))
    assert out_bf.dtype == jnp.bfloat16
    ref_bf = level_layer_ref(level_bf.astype(jnp.float32),
                             growth_bf.astype(jnp.float32), season_bf.astype(jnp.float32),
                             wg_bf.astype(jnp.float32), bg2,
                             ws_bf.astype(jnp.float32), bs2, alpha, v0)
    err_bf = float(jnp.max(jnp.abs(out_bf.astype(jnp.float32) - ref_bf)))
    assert jnp.allclose(out_bf.astype(jnp.float32), ref_bf, atol=5e-2, rtol=5e-2), err_bf

    print("KERNEL_OK")
</pallas_src>

<mosaic_0001>
module attributes {stable_mosaic.version = 11 : i64} {
  func.func @level_layer_kernel(%arg0: i32, %arg1: memref<4x16xf32, #tpu.memory_space<vmem>>, %arg2: memref<2x8x32xf32, #tpu.memory_space<vmem>>, %arg3: memref<2x8x32xf32, #tpu.memory_space<vmem>>, %arg4: memref<4x32xf32, #tpu.memory_space<vmem>>, %arg5: memref<4x1xf32, #tpu.memory_space<vmem>>, %arg6: memref<4x32xf32, #tpu.memory_space<vmem>>, %arg7: memref<4x1xf32, #tpu.memory_space<vmem>>, %arg8: memref<4x1xf32, #tpu.memory_space<vmem>>, %arg9: memref<4x1xf32, #tpu.memory_space<vmem>>, %arg10: memref<4x16xf32, #tpu.memory_space<vmem>>) attributes {dimension_semantics = [#tpu.dimension_semantics<parallel>], iteration_bounds = array<i64: 1>, scalar_prefetch = 0 : i64, scratch_operands = 0 : i64, tpu.core_type = #tpu.core_type<tc>, window_params = [{transform_indices = @transform_0, window_bounds = array<i64: 4, 16>}, {transform_indices = @transform_1, window_bounds = array<i64: 2, 8, 32>}, {transform_indices = @transform_2, window_bounds = array<i64: 2, 8, 32>}, {pipeline_mode = #tpu.pipeline_mode<synchronous>, transform_indices = @transform_3, window_bounds = array<i64: 4, 32>}, {pipeline_mode = #tpu.pipeline_mode<synchronous>, transform_indices = @transform_4, window_bounds = array<i64: 4, 1>}, {pipeline_mode = #tpu.pipeline_mode<synchronous>, transform_indices = @transform_5, window_bounds = array<i64: 4, 32>}, {pipeline_mode = #tpu.pipeline_mode<synchronous>, transform_indices = @transform_6, window_bounds = array<i64: 4, 1>}, {pipeline_mode = #tpu.pipeline_mode<synchronous>, transform_indices = @transform_7, window_bounds = array<i64: 4, 1>}, {pipeline_mode = #tpu.pipeline_mode<synchronous>, transform_indices = @transform_8, window_bounds = array<i64: 4, 1>}, {transform_indices = @transform_9, window_bounds = array<i64: 4, 16>}]} {
    %c0 = arith.constant 0 : index
    %c0_0 = arith.constant 0 : index
    %0 = vector.load %arg8[%c0, %c0_0] : memref<4x1xf32, #tpu.memory_space<vmem>>, vector<4x1xf32>
    %c0_1 = arith.constant 0 : index
    %c0_2 = arith.constant 0 : index
    %1 = vector.load %arg9[%c0_1, %c0_2] : memref<4x1xf32, #tpu.memory_space<vmem>>, vector<4x1xf32>
    %c0_3 = arith.constant 0 : index
    %c0_4 = arith.constant 0 : index
    %2 = vector.load %arg5[%c0_3, %c0_4] : memref<4x1xf32, #tpu.memory_space<vmem>>, vector<4x1xf32>
    %c0_5 = arith.constant 0 : index
    %c0_6 = arith.constant 0 : index
    %3 = vector.load %arg7[%c0_5, %c0_6] : memref<4x1xf32, #tpu.memory_space<vmem>>, vector<4x1xf32>
    %c0_7 = arith.constant 0 : index
    %c0_8 = arith.constant 0 : index
    %c0_9 = arith.constant 0 : index
    %4 = vector.load %arg2[%c0_7, %c0_8, %c0_9] : memref<2x8x32xf32, #tpu.memory_space<vmem>>, vector<2x8x32xf32>
    %5 = vector.shape_cast %4 : vector<2x8x32xf32> to vector<16x32xf32>
    %c0_10 = arith.constant 0 : index
    %c0_11 = arith.constant 0 : index
    %c0_12 = arith.constant 0 : index
    %6 = vector.load %arg3[%c0_10, %c0_11, %c0_12] : memref<2x8x32xf32, #tpu.memory_space<vmem>>, vector<2x8x32xf32>
    %7 = vector.shape_cast %6 : vector<2x8x32xf32> to vector<16x32xf32>
    %c0_13 = arith.constant 0 : index
    %c0_14 = arith.constant 0 : index
    %8 = vector.load %arg4[%c0_13, %c0_14] : memref<4x32xf32, #tpu.memory_space<vmem>>, vector<4x32xf32>
    %cst = arith.constant dense<0.000000e+00> : vector<4x16xf32>
    %9 = tpu.matmul %8, %5, %cst {dimension_numbers = #tpu.dot_dimension_numbers<[1], [1], [0], [0], [0, 0, 1, 0], [], []>} : vector<4x32xf32>, vector<16x32xf32>, vector<4x16xf32> -> vector<4x16xf32>
    %10 = vector.broadcast %2 : vector<4x1xf32> to vector<4x16xf32>
    %11 = arith.addf %9, %10 : vector<4x16xf32>
    %c0_15 = arith.constant 0 : index
    %c0_16 = arith.constant 0 : index
    %12 = vector.load %arg6[%c0_15, %c0_16] : memref<4x32xf32, #tpu.memory_space<vmem>>, vector<4x32xf32>
    %cst_17 = arith.constant dense<0.000000e+00> : vector<4x16xf32>
    %13 = tpu.matmul %12, %7, %cst_17 {dimension_numbers = #tpu.dot_dimension_numbers<[1], [1], [0], [0], [0, 0, 1, 0], [], []>} : vector<4x32xf32>, vector<16x32xf32>, vector<4x16xf32> -> vector<4x16xf32>
    %14 = vector.broadcast %3 : vector<4x1xf32> to vector<4x16xf32>
    %15 = arith.addf %13, %14 : vector<4x16xf32>
    %c0_18 = arith.constant 0 : index
    %c0_19 = arith.constant 0 : index
    %16 = vector.load %arg1[%c0_18, %c0_19] : memref<4x16xf32, #tpu.memory_space<vmem>>, vector<4x16xf32>
    %17 = arith.subf %16, %15 : vector<4x16xf32>
    %18 = tpu.iota {dimensions = array<i32: 1>} : vector<1x8xi32>
    %19 = tpu.concatenate %18, %18 in 1 : vector<1x8xi32>, vector<1x8xi32> -> vector<1x16xi32>
    %cst_20 = arith.constant 1.000000e+00 : f32
    %20 = vector.broadcast %cst_20 : f32 to vector<4x1xf32>
    %21 = arith.subf %20, %0 : vector<4x1xf32>
    %22 = vector.broadcast %21 : vector<4x1xf32> to vector<4x16xf32>
    %23 = arith.mulf %22, %17 : vector<4x16xf32>
    %c1_i32 = arith.constant 1 : i32
    %24 = vector.broadcast %c1_i32 : i32 to vector<1x16xi32>
    %25 = arith.cmpi sge, %19, %24 : vector<1x16xi32>
    %26 = vector.extract_strided_slice %23 {offsets = [0, 15], sizes = [4, 1], strides = [1, 1]} : vector<4x16xf32> to vector<4x1xf32>
    %27 = vector.extract_strided_slice %23 {offsets = [0, 0], sizes = [4, 15], strides = [1, 1]} : vector<4x16xf32> to vector<4x15xf32>
    %28 = tpu.concatenate %26, %27 in 1 : vector<4x1xf32>, vector<4x15xf32> -> vector<4x16xf32>
    %cst_21 = arith.constant 0.000000e+00 : f32
    %29 = vector.shape_cast %25 : vector<1x16xi1> to vector<1x16xi1>
    %30 = vector.broadcast %29 : vector<1x16xi1> to vector<4x16xi1>
    %31 = vector.broadcast %cst_21 : f32 to vector<4x16xf32>
    %32 = arith.select %30, %28, %31 : vector<4x16xi1>, vector<4x16xf32>
    %33 = vector.broadcast %0 : vector<4x1xf32> to vector<4x16xf32>
    %34 = arith.mulf %33, %32 : vector<4x16xf32>
    %35 = arith.addf %34, %23 : vector<4x16xf32>
    %36 = arith.mulf %0, %0 : vector<4x1xf32>
    %c2_i32 = arith.constant 2 : i32
    %37 = vector.broadcast %c2_i32 : i32 to vector<1x16xi32>
    %38 = arith.cmpi sge, %19, %37 : vector<1x16xi32>
    %39 = vector.extract_strided_slice %35 {offsets = [0, 14], sizes = [4, 2], strides = [1, 1]} : vector<4x16xf32> to vector<4x2xf32>
    %40 = vector.extract_strided_slice %35 {offsets = [0, 0], sizes = [4, 14], strides = [1, 1]} : vector<4x16xf32> to vector<4x14xf32>
    %41 = tpu.concatenate %39, %40 in 1 : vector<4x2xf32>, vector<4x14xf32> -> vector<4x16xf32>
    %cst_22 = arith.constant 0.000000e+00 : f32
    %42 = vector.shape_cast %38 : vector<1x16xi1> to vector<1x16xi1>
    %43 = vector.broadcast %42 : vector<1x16xi1> to vector<4x16xi1>
    %44 = vector.broadcast %cst_22 : f32 to vector<4x16xf32>
    %45 = arith.select %43, %41, %44 : vector<4x16xi1>, vector<4x16xf32>
    %46 = vector.broadcast %36 : vector<4x1xf32> to vector<4x16xf32>
    %47 = arith.mulf %46, %45 : vector<4x16xf32>
    %48 = arith.addf %47, %35 : vector<4x16xf32>
    %49 = arith.mulf %36, %36 : vector<4x1xf32>
    %c4_i32 = arith.constant 4 : i32
    %50 = vector.broadcast %c4_i32 : i32 to vector<1x16xi32>
    %51 = arith.cmpi sge, %19, %50 : vector<1x16xi32>
    %52 = vector.extract_strided_slice %48 {offsets = [0, 12], sizes = [4, 4], strides = [1, 1]} : vector<4x16xf32> to vector<4x4xf32>
    %53 = vector.extract_strided_slice %48 {offsets = [0, 0], sizes = [4, 12], strides = [1, 1]} : vector<4x16xf32> to vector<4x12xf32>
    %54 = tpu.concatenate %52, %53 in 1 : vector<4x4xf32>, vector<4x12xf32> -> vector<4x16xf32>
    %cst_23 = arith.constant 0.000000e+00 : f32
    %55 = vector.shape_cast %51 : vector<1x16xi1> to vector<1x16xi1>
    %56 = vector.broadcast %55 : vector<1x16xi1> to vector<4x16xi1>
    %57 = vector.broadcast %cst_23 : f32 to vector<4x16xf32>
    %58 = arith.select %56, %54, %57 : vector<4x16xi1>, vector<4x16xf32>
    %59 = vector.broadcast %49 : vector<4x1xf32> to vector<4x16xf32>
    %60 = arith.mulf %59, %58 : vector<4x16xf32>
    %61 = arith.addf %60, %48 : vector<4x16xf32>
    %62 = math.log %0 : vector<4x1xf32>
    %63 = arith.sitofp %18 : vector<1x8xi32> to vector<1x8xf32>
    %cst_24 = arith.constant 1.000000e+00 : f32
    %64 = vector.broadcast %cst_24 : f32 to vector<1x8xf32>
    %65 = arith.addf %63, %64 : vector<1x8xf32>
    %66 = vector.broadcast %65 : vector<1x8xf32> to vector<4x8xf32>
    %67 = vector.broadcast %62 : vector<4x1xf32> to vector<4x8xf32>
    %68 = arith.mulf %66, %67 : vector<4x8xf32>
    %69 = math.exp %68 : vector<4x8xf32>
    %cst_25 = arith.constant 8.000000e+00 : f32
    %70 = vector.broadcast %cst_25 : f32 to vector<1x8xf32>
    %71 = arith.subf %70, %63 : vector<1x8xf32>
    %72 = vector.broadcast %71 : vector<1x8xf32> to vector<4x8xf32>
    %73 = vector.broadcast %62 : vector<4x1xf32> to vector<4x8xf32>
    %74 = arith.mulf %72, %73 : vector<4x8xf32>
    %75 = math.exp %74 : vector<4x8xf32>
    %76 = tpu.concatenate %69, %69 in 1 : vector<4x8xf32>, vector<4x8xf32> -> vector<4x16xf32>
    %77 = vector.broadcast %1 : vector<4x1xf32> to vector<4x16xf32>
    %78 = arith.mulf %76, %77 : vector<4x16xf32>
    %79 = arith.addf %78, %61 : vector<4x16xf32>
    %80 = tpu.concatenate %75, %75 in 1 : vector<4x8xf32>, vector<4x8xf32> -> vector<4x16xf32>
    %81 = arith.mulf %80, %11 : vector<4x16xf32>
    %82 = arith.addf %79, %81 : vector<4x16xf32>
    %c0_26 = arith.constant 0 : index
    %c0_27 = arith.constant 0 : index
    %83 = vector.load %arg10[%c0_26, %c0_27] : memref<4x16xf32, #tpu.memory_space<vmem>>, vector<4x16xf32>
    tpu.vector_store %arg10[%c0_26, %c0_27], %82 {strides = array<i32>} : memref<4x16xf32, #tpu.memory_space<vmem>>, vector<4x16xf32>,
    return
  }
  func.func @transform_0(%arg0: i32) -> (i32, i32) {
    %c0_i32 = arith.constant 0 : i32
    %c0_i32_0 = arith.constant 0 : i32
    return %c0_i32, %arg0 : i32, i32
  }
  func.func @transform_1(%arg0: i32) -> (i32, i32, i32) {
    %c0_i32 = arith.constant 0 : i32
    %c0_i32_0 = arith.constant 0 : i32
    %c0_i32_1 = arith.constant 0 : i32
    return %arg0, %c0_i32, %c0_i32_0 : i32, i32, i32
  }
  func.func @transform_2(%arg0: i32) -> (i32, i32, i32) {
    %c0_i32 = arith.constant 0 : i32
    %c0_i32_0 = arith.constant 0 : i32
    %c0_i32_1 = arith.constant 0 : i32
    return %arg0, %c0_i32, %c0_i32_0 : i32, i32, i32
  }
  func.func @transform_3(%arg0: i32) -> (i32, i32) {
    %c0_i32 = arith.constant 0 : i32
    %c0_i32_0 = arith.constant 0 : i32
    %c0_i32_1 = arith.constant 0 : i32
    return %c0_i32, %c0_i32_0 : i32, i32
  }
  func.func @transform_4(%arg0: i32) -> (i32, i32) {
    %c0_i32 = arith.constant 0 : i32
    %c0_i32_0 = arith.constant 0 : i32
    %c0_i32_1 = arith.constant 0 : i32
    return %c0_i32, %c0_i32_0 : i32, i32
  }
  func.func @transform_5(%arg0: i32) -> (i32, i32) {
    %c0_i32 = arith.constant 0 : i32
    %c0_i32_0 = arith.constant 0 : i32
    %c0_i32_1 = arith.constant 0 : i32
    return %c0_i32, %c0_i32_0 : i32, i32
  }
  func.func @transform_6(%arg0: i32) -> (i32, i32) {
    %c0_i32 = arith.constant 0 : i32
    %c0_i32_0 = arith.constant 0 : i32
    %c0_i32_1 = arith.constant 0 : i32
    return %c0_i32, %c0_i32_0 : i32, i32
  }
  func.func @transform_7(%arg0: i32) -> (i32, i32) {
    %c0_i32 = arith.constant 0 : i32
    %c0_i32_0 = arith.constant 0 : i32
    %c0_i32_1 = arith.constant 0 : i32
    return %c0_i32, %c0_i32_0 : i32, i32
  }
  func.func @transform_8(%arg0: i32) -> (i32, i32) {
    %c0_i32 = arith.constant 0 : i32
    %c0_i32_0 = arith.constant 0 : i32
    %c0_i32_1 = arith.constant 0 : i32
    return %c0_i32, %c0_i32_0 : i32, i32
  }
  func.func @transform_9(%arg0: i32) -> (i32, i32) {
    %c0_i32 = arith.constant 0 : i32
    %c0_i32_0 = arith.constant 0 : i32
    return %c0_i32, %arg0 : i32, i32
  }
}

</mosaic_0001>

<bundles_post_ra>
// kernel: tpu_custom_call.1
= control target key start
LH: loop header
LB: loop body
LE: loop exit
PB: predicated region body
PF: predicated region fallthrough
CT: control target
= control target key end

     0   :  { %14 = vsyncpa [#allocation3], 0  ;;  %s494_s0 = inlined_call_operand.vmem [shape: f32[4,16], index: 0, kind: input, shape index: {}]   ;;  %s495_s1 = inlined_call_operand.hbm [shape: f32[2,8,32], index: 1, kind: input, shape index: {}]   ;;  %s496_s2 = inlined_call_operand.hbm [shape: f32[2,8,32], index: 2, kind: input, shape index: {}]   ;;  %s497_s3 = inlined_call_operand.vmem [shape: f32[4,32], index: 3, kind: input, shape index: {}]   ;;  %s498_s4 = inlined_call_operand.vmem [shape: f32[4,1], index: 4, kind: input, shape index: {}]   ;;  %s499_s5 = inlined_call_operand.vmem [shape: f32[4,32], index: 5, kind: input, shape index: {}]   ;;  %s500_s6 = inlined_call_operand.vmem [shape: f32[4,1], index: 6, kind: input, shape index: {}]   ;;  %s501_s7 = inlined_call_operand.vmem [shape: f32[4,1], index: 7, kind: input, shape index: {}]   ;;  %s502_s8 = inlined_call_operand.vmem [shape: f32[4,1], index: 8, kind: input, shape index: {}]   ;;  %s503_s9 = inlined_call_operand.hbm [shape: f32[4,16], index: 9, kind: output, shape index: {}]  }
   0x1   :  { %15 = vsyncpa [#allocation6], 0 }
   0x2   :  { %16 = vsyncpa [#allocation4], 0  ;;  %s23_s11 = sshll.u32 %s495_s1, 4  ;;  %s383_s12 = smov [#allocation2]   ;;  %s24_s11 = int_to_ptr.hbm [resolvable:$true] %s23_s11 }
   0x3   :  { %s25_s13 = sshll.u32 %s383_s12, 4  ;;  %s36_s16 = sshll.u32 %s496_s2, 4  ;;  %s26_s13 = int_to_ptr.vmem [resolvable:$true] %s25_s13  ;;  %s37_s16 = int_to_ptr.hbm [resolvable:$true] %s36_s16 }
   0x4   :  { %s384_s17 = smov 128   ;;  %s385_s18 = smov 8  }
   0x5   :  { %31 = dma.hbm_to_vmem [thread:$0]  %s24_s11, 256, %s26_s13, [#allocation3], %s384_s17, %s384_s17, %s385_s18  }
   0x6   :  { %s386_s19 = smov [#allocation5]  }
   0x7   :  { %s38_s20 = sshll.u32 %s386_s19, 4  ;;  %s39_s20 = int_to_ptr.vmem [resolvable:$true] %s38_s20 }
   0x8   :  { %44 = dma.hbm_to_vmem [thread:$0]  %s37_s16, 256, %s39_s20, [#allocation6], %s384_s17, %s384_s17, %s385_s18  }
   0x9   :  { %377 = dma.done.wait [#allocation3], 256  }
   0xa   :  { %378 = vsyncadd [#allocation3], 4294967040 }
   0xb   :  { %379 = dma.done.wait [#allocation6], 256  }
   0xc   :  { %380 = vsyncadd [#allocation6], 4294967040  ;;  %v387_v0 = vmov 0   ;;  %vm79_vm0 = vcmask 261120   ;;  %v72_v1 = vld [vmem:[#allocation5 + $0x8] sm:$0xff]  ;;  %v71_v4 = vld [vmem:[#allocation5] sm:$0xff]  ;;  %v146_v12 = vlaneseq }
   0xd   :  { %297 = vset.pattern.permute.xlu0 %v387_v0  ;;  %298 = vset.pattern.permute.xlu2 %v387_v0  ;;  %v68_v2 = vld [vmem:[%s500_s6] sm:$0xf]  ;;  %s389_s26 = smov 113   ;;  %v70_v25 = vld [vmem:[#allocation2 + $0x8] sm:$0xff]  ;;  %vm150_vm1 = vcmask 64512   ;;  %vm167_vm3 = vcmask 7168  }
   0xe   :  { %282 = vmatpush.xpose.msk.msra.mxu1 %vm79_vm0, %v72_v1  ;;  %112 = vperm.xlu0 %297, %v68_v2   ;;  %v65_v3 = vld [vmem:[%s501_s7] sm:$0xf]  ;;  %v147_v13 = vand.u32 127, %v146_v12  ;;  %s391_s27 = smov 114   ;;  %vm189_vm6 = vcmask 15360   ;;  %s392_s30 = smov 4  }
   0xf   :  { %299 = vlog2.f32 %v65_v3  ;;  %v109_v5 = vld [vmem:[%s499_s5] sm:$0xf]  ;;  %v152_v6 = vsub.f32 1.0, %v65_v3  ;;  %v180_v9 = vmul.f32 %v65_v3, %v65_v3  ;;  %279 = vmatpush.xpose.msk.msra.mxu0 %vm79_vm0, %v70_v25  ;;  %s393_s10 = smov 116   ;;  %vm211_vm9 = vcmask 31744   ;;  %s268_s15 = sshll.u32 %s503_s9, 4  ;;  %s269_s15 = int_to_ptr.hbm [resolvable:$true] %s268_s15 }
  0x10   :  { %v66_v11 = vld [vmem:[%s502_s8] sm:$0xf]  ;;  %148 = vrot.lane.b32.xlu1 %v147_v13, %s385_s18  ;;  %v226_v16 = vcvt.s32.f32 %v147_v13  ;;  %s388_s8 = smov 1   ;;  %vm259_vm11 = vcmask 125952  }
  0x11   :  { %v202_v10 = vmul.f32 %v180_v9, %v180_v9  ;;  %v144_v21 = vld [vmem:[%s494_s0] sm:$0xf]  ;;  %s390_s0 = smov 2  }
  0x12   :  { %283 = vmatpush.xpose.msk.msra.mxu1 %vm79_vm0, %v71_v4  ;;  %v236_v17 = vsub.f32 8.0, %v226_v16  ;;  %v227_v30 = vadd.f32 1.0, %v226_v16  ;;  %v69_v41 = vld [vmem:[#allocation2] sm:$0xff] }
  0x13   :  { %280 = vmatpush.xpose.msk.msra.mxu0 %vm79_vm0, %v69_v41  ;;  %v73_v42 = vld [vmem:[%s497_s3] sm:$0xf] }
  0x14   :  { %v67_v53 = vld [vmem:[%s498_s4] sm:$0xf]  ;;  %s394_s4 = smov [#allocation7]  }
  0x15   :  { %284 = vmatmul.msk.f32.vlgmr.msra.gmra.mxu1 %vm79_vm0, %v109_v5  ;;  %v300_v7 = vpop.eup %299  ;;  %s266_s12 = sshll.u32 %s394_s4, 4  ;;  %s267_s12 = int_to_ptr.vmem [resolvable:$true] %s266_s12 }
  0x16   :  { %155 = vperm.xlu0 %297, %v152_v6   ;;  %v225_v8 = vmul.f32 0.6931472, %v300_v7  ;;  %281 = vmatmul.msk.f32.vlgmr.msra.gmra.mxu0 %vm79_vm0, %v73_v42 }
  0x1e   :  { %230 = vperm.xlu0 %297, %v225_v8  }
  0x26   :  { %197 = vperm.xlu0 %297, %v180_v9  }
  0x2e   :  { %219 = vperm.xlu0 %297, %v202_v10  }
  0x36   :  { %247 = vperm.xlu0 %297, %v66_v11  }
  0x80   :  { %v113_v14 = vpop.permute.xlu0 %112 }
  0x82   :  { %v149_v26 = vpop.permute.xlu1 %148 }
  0x83   :  { %v151_v27 = vsel %vm150_vm1, %v147_v13, %v149_v26 }
  0x84   :  { %vm159_vm2 = vcmp.ge.s32.totalorder %v151_v27, 1  ;;  %vm181_vm5 = vcmp.ge.s32.totalorder %v151_v27, 2  ;;  %vm203_vm8 = vcmp.ge.s32.totalorder %v151_v27, 4 }
  0x85   :  { %v169_v29 = vsel %vm159_vm2, 1, %v387_v0  ;;  %v191_v43 = vsel %vm181_vm5, 1, %v387_v0  ;;  %v213_v56 = vsel %vm203_vm8, 1, %v387_v0 }
  0x86   :  { %v170_v31 = vperm.slane %v169_v29, 0  ;;  %v192_v44 = vperm.slane %v191_v43, 0  ;;  %v214_v59 = vperm.slane %v213_v56, 0 }
  0x88   :  { %v156_v15 = vpop.permute.xlu0 %155  ;;  %vm171_vm4 = vcmp.eq.s32.totalorder %v170_v31, 1  ;;  %vm193_vm7 = vcmp.eq.s32.totalorder %v192_v44, 1  ;;  %vm215_vm10 = vcmp.eq.s32.totalorder %v214_v59, 1 }
  0x90   :  { %v231_v18 = vpop.permute.xlu0 %230 }
  0x91   :  { %v237_v19 = vmul.f32 %v236_v17, %v231_v18  ;;  %v233_v32 = vmul.f32 %v231_v18, %v227_v30 }
  0x92   :  { %v141_v20 = vpop.f32.mrf.mxu1 }
  0x93   :  { %v142_v22 = vadd.f32 %v141_v20, %v113_v14  ;;  %v234_v38 = vmul.f32 1.442695, %v233_v32  ;;  %v238_v51 = vmul.f32 1.442695, %v237_v19  ;;  %v106_v2 = vpop.f32.mrf.mxu0 }
  0x95   :  { %v145_v23 = vsub.f32 %v144_v21, %v142_v22  ;;  %301 = vpow2.f32 %v234_v38 }
  0x96   :  { %303 = vpow2.f32 %v238_v51 }
  0x97   :  { %v158_v24 = vmul.f32 %v156_v15, %v145_v23 }
  0x98   :  { %v198_v48 = vpop.permute.xlu0 %197 }
  0x99   :  { %164 = vrot.lane.b32.xlu2 %v158_v24, %s388_s8  ;;  %161 = vrot.lane.b32.xlu1 %v158_v24, %s389_s26 }
  0x9b   :  { %v302_v40 = vpop.eup %301 }
  0x9c   :  { %v304_v54 = vpop.eup %303 }
  0xa0   :  { %v220_v58 = vpop.permute.xlu0 %219 }
  0xa1   :  { %175 = vperm.xlu2 %298, %v65_v3  }
  0xa8   :  { %v248_v5 = vpop.permute.xlu0 %247 }
  0xf3   :  { %v165_v28 = vpop.permute.xlu2 %164 }
  0xfb   :  { %v176_v34 = vpop.permute.xlu2 %175 }
 0x10b   :  { %v162_v33 = vpop.permute.xlu1 %161 }
 0x10c   :  { %v168_v35 = vsel %vm167_vm3, %v162_v33, %v165_v28 }
 0x10d   :  { %v172_v36 = vsel %vm171_vm4, %v168_v35, 0.0 }
 0x10e   :  { %v178_v37 = vmul.f32 %v176_v34, %v172_v36 }
 0x110   :  { %v179_v39 = vadd.f32 %v178_v37, %v158_v24 }
 0x112   :  { %186 = vrot.lane.b32.xlu2 %v179_v39, %s390_s0  ;;  %183 = vrot.lane.b32.xlu1 %v179_v39, %s391_s27 }
 0x11a   :  { %241 = vrot.lane.b32.xlu1 %v302_v40, %s385_s18 }
 0x16c   :  { %v187_v45 = vpop.permute.xlu2 %186 }
 0x184   :  { %v184_v46 = vpop.permute.xlu1 %183 }
 0x185   :  { %v190_v47 = vsel %vm189_vm6, %v184_v46, %v187_v45 }
 0x186   :  { %v194_v49 = vsel %vm193_vm7, %v190_v47, 0.0 }
 0x187   :  { %v200_v50 = vmul.f32 %v198_v48, %v194_v49 }
 0x189   :  { %v201_v52 = vadd.f32 %v200_v50, %v179_v39 }
 0x18b   :  { %208 = vrot.lane.b32.xlu2 %v201_v52, %s392_s30  ;;  %205 = vrot.lane.b32.xlu1 %v201_v52, %s393_s10 }
 0x18c   :  { %v242_v55 = vpop.permute.xlu1 %241 }
 0x18d   :  { %v244_v1 = vsel %vm150_vm1, %v302_v40, %v242_v55 }
 0x18e   :  { %v250_v6 = vmul.f32 %v248_v5, %v244_v1 }
 0x193   :  { %76 = vperm.xlu2 %298, %v67_v53   ;;  %253 = vrot.lane.b32.xlu1 %v304_v54, %s385_s18 }
 0x1e5   :  { %v209_v57 = vpop.permute.xlu2 %208 }
 0x1ed   :  { %v77_v3 = vpop.permute.xlu2 %76 }
 0x1ee   :  { %v107_v7 = vadd.f32 %v106_v2, %v77_v3 }
 0x1fd   :  { %v206_v60 = vpop.permute.xlu1 %205 }
 0x1fe   :  { %v212_v61 = vsel %vm211_vm9, %v206_v60, %v209_v57 }
 0x1ff   :  { %v216_v62 = vsel %vm215_vm10, %v212_v61, 0.0 }
 0x200   :  { %v222_v63 = vmul.f32 %v220_v58, %v216_v62 }
 0x202   :  { %v223_v4 = vadd.f32 %v222_v63, %v201_v52 }
 0x204   :  { %v251_v9 = vadd.f32 %v250_v6, %v223_v4 }
 0x205   :  { %v254_v8 = vpop.permute.xlu1 %253 }
 0x206   :  { %v256_v0 = vsel %vm150_vm1, %v304_v54, %v254_v8 }
 0x207   :  { %v257_v10 = vmul.f32 %v256_v0, %v107_v7 }
 0x209   :  { %v258_v11 = vadd.f32 %v257_v10, %v251_v9 }
 0x20b   :  { %260 = vst.msk [vmem:[#allocation7] sm:$0xf] %vm259_vm11, %v258_v11 }
 0x20c   :  { %271 = dma.vmem_to_hbm [thread:$0]  %s267_s12, 64, %s269_s15, [#allocation4]  }
 0x20d   :  { %381 = dma.done.wait [#allocation4], 64  }
 0x20e   :  { %382 = vsyncadd [#allocation4], 4294967232 }
 0x20f   :  { %276 = vsyncpa [#allocation3], 1 }
 0x210   :  { %277 = vsyncpa [#allocation6], 1 }
 0x211   :  { %278 = vsyncpa [#allocation4], 1 }

</bundles_post_ra>
